<compile_context>
chip_gen: v5e
topology: v5e:2x2
jax: 0.10.0
libtpu: 0.0.40
codegen_flags: <defaults>
</compile_context>

<pallas_src>
import jax
import jax.numpy as jnp
from jax import lax
from jax.experimental import pallas as pl
from jax.experimental.pallas import tpu as pltpu


def _lut_gather_kernel(ids_ref, nrows_ref, mask_ref, table_hbm, bias_ref,
                       out_ref, rows_vmem, sem):
    """One grid step == one tile of `tile_rows` flattened (batch*seq) rows."""
    t = pl.program_id(0)
    tile_rows = out_ref.shape[0]          # static
    base = t * tile_rows                  # first flattened row of this tile
    n = nrows_ref[t]                      # number of real (non-padding) rows in tile

    # Phase 1: launch one row-gather DMA per real row (shared DMA semaphore).
    def _start(r, carry):
        tok = ids_ref[base + r]           # SMEM scalar read
        pltpu.make_async_copy(
            table_hbm.at[pl.ds(tok, 1), :],
            rows_vmem.at[pl.ds(r, 1), :],
            sem,
        ).start()
        return carry

    lax.fori_loop(0, n, _start, 0)

    # Phase 2: wait for all n equal-sized copies on the shared semaphore.
    def _wait(r, carry):
        pltpu.make_async_copy(
            table_hbm.at[pl.ds(0, 1), :],
            rows_vmem.at[pl.ds(r, 1), :],
            sem,
        ).wait()
        return carry

    lax.fori_loop(0, n, _wait, 0)

    # Phase 3: bias + mask.  jnp.where (not multiply) so stale VMEM in
    # never-gathered padding rows can never leak (even NaNs).
    valid = mask_ref[...] > 0.5                                   # (tile_rows, 1)
    out_ref[...] = jnp.where(valid, rows_vmem[...] + bias_ref[...], 0.0)


def tokenizer_lut_conditioner(input_ids, attention_mask, emb_table, proj_w, proj_b,
                              *, tile_rows=128):
    """input_ids: (B, L) int32; attention_mask: (B, L) bool;
       emb_table: (V, D); proj_w: (D, D) [PyTorch layout: (out, in)]; proj_b: (D,)."""
    B, L = input_ids.shape
    V, D = emb_table.shape

    # ---- weight-load-time prep (cached once in a real deployment) ----
    # Fold the output projection into the LUT (exact reassociation).
    table_eff = jnp.dot(emb_table, proj_w.T,
                        precision=lax.Precision.HIGHEST)          # (V, D) f32
    # Lane-dense padding of the feature dim to a multiple of 128.
    D_pad = ((D + 127) // 128) * 128
    if D_pad != D:
        table_eff = jnp.pad(table_eff, ((0, 0), (0, D_pad - D)))
        bias = jnp.pad(proj_b, (0, D_pad - D)).reshape(1, D_pad)
    else:
        bias = proj_b.reshape(1, D_pad)

    # ---- per-call prep: flatten batch*seq into row tiles ----
    R = B * L
    num_tiles = max(1, pl.cdiv(R, tile_rows))
    R_pad = num_tiles * tile_rows

    ids_flat = jnp.clip(input_ids.reshape(R), 0, V - 1).astype(jnp.int32)
    ids_flat = jnp.pad(ids_flat, (0, R_pad - R))                  # pad ids -> row 0 (masked anyway)
    mask2d = jnp.pad(attention_mask.reshape(R).astype(jnp.float32),
                     (0, R_pad - R)).reshape(R_pad, 1)
    # Real rows per tile (lets padded tail tiles skip their gather DMAs).
    tile_valid = jnp.clip(R - jnp.arange(num_tiles, dtype=jnp.int32) * tile_rows,
                          0, tile_rows).astype(jnp.int32)

    out = pl.pallas_call(
        _lut_gather_kernel,
        out_shape=jax.ShapeDtypeStruct((R_pad, D_pad), jnp.float32),
        grid_spec=pltpu.PrefetchScalarGridSpec(
            num_scalar_prefetch=2,                                 # ids, per-tile row counts -> SMEM
            grid=(num_tiles,),
            in_specs=[
                pl.BlockSpec((tile_rows, 1), lambda t, ids, nv: (t, 0)),   # mask tile
                pl.BlockSpec(memory_space=pl.ANY),                          # folded LUT stays in HBM
                pl.BlockSpec((1, D_pad), lambda t, ids, nv: (0, 0)),        # bias (tiny, resident)
            ],
            out_specs=pl.BlockSpec((tile_rows, D_pad), lambda t, ids, nv: (t, 0)),
            scratch_shapes=[
                pltpu.VMEM((tile_rows, D_pad), jnp.float32),       # gathered rows
                pltpu.SemaphoreType.DMA(()),                       # shared gather semaphore
            ],
        ),
        compiler_params=pltpu.CompilerParams(
            dimension_semantics=("parallel",)),
    )(ids_flat, tile_valid, mask2d, table_eff, bias)

    out = out[:R, :D].reshape(B, L, D)
    return out, attention_mask


def _reference(input_ids, attention_mask, emb_table, proj_w, proj_b):
    emb = emb_table[input_ids]                                     # (B, L, D)
    proj = jnp.einsum("bld,od->blo", emb, proj_w,
                      precision=lax.Precision.HIGHEST) + proj_b    # Linear(D, D)
    return proj * attention_mask[..., None].astype(jnp.float32)


if __name__ == "__main__":
    key = jax.random.PRNGKey(0)
    k_ids, k_len, k_emb, k_w, k_b = jax.random.split(key, 5)

    # Small shapes: batch=2, max_length=8, output_dim=32, synthetic vocab=128
    B, L, D, V = 2, 8, 32, 128

    # Synthetic "tokenizer output": deterministic ids + padding mask.
    input_ids = jax.random.randint(k_ids, (B, L), 0, V, dtype=jnp.int32)
    valid_lens = jnp.array([L, L - 3], dtype=jnp.int32)            # second sequence padded
    attention_mask = (jnp.arange(L)[None, :] < valid_lens[:, None])  # (B, L) bool
    input_ids = jnp.where(attention_mask, input_ids, 0)

    # Deterministic parameters (nn.Embedding(V, D), nn.Linear(D, D) with project_out=True).
    emb_table = jax.random.normal(k_emb, (V, D), dtype=jnp.float32) * 0.02
    proj_w = jax.random.normal(k_w, (D, D), dtype=jnp.float32) * (1.0 / jnp.sqrt(D))
    proj_b = jax.random.normal(k_b, (D,), dtype=jnp.float32) * 0.01

    out, mask_out = tokenizer_lut_conditioner(
        input_ids, attention_mask, emb_table, proj_w, proj_b)
    out = jax.block_until_ready(out)

    ref = _reference(input_ids, attention_mask, emb_table, proj_w, proj_b)
    assert out.shape == (B, L, D)
    assert mask_out.dtype == jnp.bool_
    # Tolerance loosened slightly: the LUT fold (E @ W^T precompute) reassociates the matmul.
    assert jnp.allclose(out, ref, atol=1e-4, rtol=1e-4), float(jnp.max(jnp.abs(out - ref)))

    print("KERNEL_OK")
</pallas_src>

<mosaic_0001>
module attributes {stable_mosaic.version = 11 : i64} {
  func.func @_lut_gather_kernel(%arg0: i32, %arg1: memref<128xi32, #tpu.memory_space<smem>>, %arg2: memref<1xi32, #tpu.memory_space<smem>>, %arg3: memref<128x1xf32, #tpu.memory_space<vmem>>, %arg4: memref<128x128xf32, #tpu.memory_space<any>>, %arg5: memref<1x128xf32, #tpu.memory_space<vmem>>, %arg6: memref<128x128xf32, #tpu.memory_space<vmem>>, %arg7: memref<128x128xf32, #tpu.memory_space<vmem>>, %arg8: memref<!tpu.dma_semaphore, #tpu.memory_space<semaphore_mem>>) attributes {dimension_semantics = [#tpu.dimension_semantics<parallel>], iteration_bounds = array<i64: 1>, scalar_prefetch = 2 : i64, scratch_operands = 2 : i64, tpu.core_type = #tpu.core_type<tc>, window_params = [{transform_indices = @transform_0, window_bounds = array<i64: 128, 1>}, {}, {pipeline_mode = #tpu.pipeline_mode<synchronous>, transform_indices = @transform_2, window_bounds = array<i64: 1, 128>}, {transform_indices = @transform_3, window_bounds = array<i64: 128, 128>}]} {
    %c128_i32 = arith.constant 128 : i32
    %0 = arith.muli %arg0, %c128_i32 : i32
    %1 = arith.index_cast %arg0 : i32 to index
    %2 = memref.load %arg2[%1] : memref<1xi32, #tpu.memory_space<smem>>
    %c0_i32 = arith.constant 0 : i32
    %c0_i32_0 = arith.constant 0 : i32
    %3 = arith.subi %2, %c0_i32_0 : i32
    %4 = arith.addi %c0_i32_0, %3 : i32
    %c1_i32 = arith.constant 1 : i32
    scf.for %arg9 = %c0_i32_0 to %4 step %c1_i32  : i32 {
      %19 = arith.addi %0, %arg9 : i32
      %20 = arith.index_cast %19 : i32 to index
      %21 = memref.load %arg1[%20] : memref<128xi32, #tpu.memory_space<smem>>
      %c0_i32_12 = arith.constant 0 : i32
      %22 = tpu.memref_slice %arg4[%21, %c0_i32_12] : memref<128x128xf32, #tpu.memory_space<any>> -> memref<1x128xf32, #tpu.memory_space<any>>
      %c0_i32_13 = arith.constant 0 : i32
      %23 = tpu.memref_slice %arg7[%arg9, %c0_i32_13] : memref<128x128xf32, #tpu.memory_space<vmem>> -> memref<1x128xf32, #tpu.memory_space<vmem>>
      tpu.enqueue_dma source(%22 : memref<1x128xf32, #tpu.memory_space<any>>) target(%23 : memref<1x128xf32, #tpu.memory_space<vmem>>) target_semaphore(%arg8 : memref<!tpu.dma_semaphore, #tpu.memory_space<semaphore_mem>>)
    }
    %c0_i32_1 = arith.constant 0 : i32
    %c0_i32_2 = arith.constant 0 : i32
    %5 = arith.subi %2, %c0_i32_2 : i32
    %6 = arith.addi %c0_i32_2, %5 : i32
    %c1_i32_3 = arith.constant 1 : i32
    scf.for %arg9 = %c0_i32_2 to %6 step %c1_i32_3  : i32 {
      %c0_i32_12 = arith.constant 0 : i32
      %c0_i32_13 = arith.constant 0 : i32
      %19 = tpu.memref_slice %arg4[%c0_i32_12, %c0_i32_13] : memref<128x128xf32, #tpu.memory_space<any>> -> memref<1x128xf32, #tpu.memory_space<any>>
      %c0_i32_14 = arith.constant 0 : i32
      %20 = tpu.memref_slice %arg7[%arg9, %c0_i32_14] : memref<128x128xf32, #tpu.memory_space<vmem>> -> memref<1x128xf32, #tpu.memory_space<vmem>>
      tpu.wait_dma2 semaphore(%arg8 : memref<!tpu.dma_semaphore, #tpu.memory_space<semaphore_mem>>) src(%19 : memref<1x128xf32, #tpu.memory_space<any>>) dst(%20 : memref<1x128xf32, #tpu.memory_space<vmem>>)
    }
    %c0 = arith.constant 0 : index
    %c0_4 = arith.constant 0 : index
    %7 = vector.load %arg3[%c0, %c0_4] : memref<128x1xf32, #tpu.memory_space<vmem>>, vector<128x1xf32>
    %cst = arith.constant 5.000000e-01 : f32
    %8 = vector.broadcast %cst : f32 to vector<128x1xf32>
    %9 = arith.cmpf ogt, %7, %8 : vector<128x1xf32>
    %c0_5 = arith.constant 0 : index
    %c0_6 = arith.constant 0 : index
    %10 = vector.load %arg7[%c0_5, %c0_6] : memref<128x128xf32, #tpu.memory_space<vmem>>, vector<128x128xf32>
    %c0_7 = arith.constant 0 : index
    %c0_8 = arith.constant 0 : index
    %11 = vector.load %arg5[%c0_7, %c0_8] : memref<1x128xf32, #tpu.memory_space<vmem>>, vector<1x128xf32>
    %12 = vector.broadcast %11 : vector<1x128xf32> to vector<128x128xf32>
    %13 = arith.addf %10, %12 : vector<128x128xf32>
    %cst_9 = arith.constant 0.000000e+00 : f32
    %14 = vector.shape_cast %9 : vector<128x1xi1> to vector<128x1xi1>
    %15 = vector.broadcast %14 : vector<128x1xi1> to vector<128x128xi1>
    %16 = vector.broadcast %cst_9 : f32 to vector<128x128xf32>
    %17 = arith.select %15, %13, %16 : vector<128x128xi1>, vector<128x128xf32>
    %c0_10 = arith.constant 0 : index
    %c0_11 = arith.constant 0 : index
    %18 = vector.load %arg6[%c0_10, %c0_11] : memref<128x128xf32, #tpu.memory_space<vmem>>, vector<128x128xf32>
    tpu.vector_store %arg6[%c0_10, %c0_11], %17 {strides = array<i32>} : memref<128x128xf32, #tpu.memory_space<vmem>>, vector<128x128xf32>,
    return
  }
  func.func @transform_0(%arg0: i32, %arg1: memref<128xi32, #tpu.memory_space<smem>>, %arg2: memref<1xi32, #tpu.memory_space<smem>>) -> (i32, i32) {
    %c0_i32 = arith.constant 0 : i32
    %c0_i32_0 = arith.constant 0 : i32
    return %arg0, %c0_i32 : i32, i32
  }
  func.func @transform_2(%arg0: i32, %arg1: memref<128xi32, #tpu.memory_space<smem>>, %arg2: memref<1xi32, #tpu.memory_space<smem>>) -> (i32, i32) {
    %c0_i32 = arith.constant 0 : i32
    %c0_i32_0 = arith.constant 0 : i32
    %c0_i32_1 = arith.constant 0 : i32
    return %c0_i32, %c0_i32_0 : i32, i32
  }
  func.func @transform_3(%arg0: i32, %arg1: memref<128xi32, #tpu.memory_space<smem>>, %arg2: memref<1xi32, #tpu.memory_space<smem>>) -> (i32, i32) {
    %c0_i32 = arith.constant 0 : i32
    %c0_i32_0 = arith.constant 0 : i32
    return %arg0, %c0_i32 : i32, i32
  }
}

</mosaic_0001>

<bundles_post_ra>
// kernel: tpu_custom_call.1
= control target key start
LH: loop header
LB: loop body
LE: loop exit
PB: predicated region body
PF: predicated region fallthrough
CT: control target
= control target key end

     0   :  { %s385_s21 = smov [#allocation5]   ;;  %s534_s0 = inlined_call_operand.vmem [shape: s32[128], index: 0, kind: input, shape index: {}]   ;;  %s535_s1 = inlined_call_operand.<no memory space> [shape: s32[1], index: 1, kind: input, shape index: {}]   ;;  %s536_s2 = inlined_call_operand.vmem [shape: f32[128,1], index: 2, kind: input, shape index: {}]   ;;  %s537_s3 = inlined_call_operand.vmem [shape: f32[128,128], index: 3, kind: input, shape index: {}]   ;;  %s538_s4 = inlined_call_operand.vmem [shape: f32[1,128], index: 4, kind: input, shape index: {}]   ;;  %s539_s5 = inlined_call_operand.hbm [shape: f32[128,128], index: 5, kind: output, shape index: {}]  }
   0x1   :  { %s11_s20 = sshll.u32 %s534_s0, 4  ;;  %s12_s20 = int_to_ptr.vmem [resolvable:$true] %s11_s20 }
   0x2   :  { %14 = dma.vmem_to_smem %s12_s20, 16, %s385_s21, [#allocation4] }
   0x3   :  { %371 = dma.done.wait [#allocation4], 16 }
   0x4   :  { %372 = vsyncadd [#allocation4], 4294967280 }
   0x5   :  { %18 = sfence }
   0x6   :  { %19 = vsyncpa [#allocation8], 0  ;;  %p299_p0 = scmp.le.s32.totalorder %s535_s1, 0 }
   0x7   :  { %s377_s26 = smov (!%p299_p0), 0  }
   0x8   :  { %291 = sbr.rel (%p299_p0) target bundleno = 30 (0x1e), region = 72 }
   0xd LB: > { %s33_s0 = sld [smem:[#allocation5 + %s379_s26]]  ;;  %s35_s30 = scalar_lea.vmem [#allocation2], %s379_s26  ;;  %s379_s26 = sphi %s377_s26, %s29_s26  }
  0x13   : > { %s34_s29 = scalar_lea.vmem %s537_s3, %s33_s0 }
  0x14   : > { %v50_v0 = vld [vmem:[%s34_s29] sm:$0x1] }
  0x15   : > { %51 = vst [vmem:[%s35_s30] sm:$0x1] %v50_v0 }
  0x16   : > { %69 = vsyncadd [#allocation3], 16  ;;  %s29_s26 = sadd.s32 1, %s379_s26  }
  0x17   : > { %p28_p1 = scmp.ge.s32.totalorder %s29_s26, %s535_s1 }
  0x19   :  { %31 = sbr.rel (!%p28_p1) target bundleno = 13 (0xd), region = 78 }
  0x1e PF:  { %296 = sbr.rel (%p299_p0) target bundleno = 44 (0x2c), region = 83  ;;  %s381_s10 = smov (!%p299_p0), 0  }
  0x23 LB: > { %373 = dma.done.wait [#allocation3], 16  ;;  %s383_s10 = sphi %s381_s10, %s73_s10  }
  0x24   : > { %374 = vsyncadd [#allocation3], 4294967280  ;;  %s73_s10 = sadd.s32 1, %s383_s10  }
  0x25   : > { %p72_p2 = scmp.ge.s32.totalorder %s73_s10, %s535_s1 }
  0x27   :  { %75 = sbr.rel (!%p72_p2) target bundleno = 35 (0x23), region = 89 }
  0x2c PF:  { %v386_v4 = vmov 0   ;;  %s265_s19 = sshll.u32 %s539_s5, 4  ;;  %s388_s20 = smov 128   ;;  %s266_s19 = int_to_ptr.hbm [resolvable:$true] %s265_s19 }
  0x2d   :  { %v83_v1 = vld [vmem:[%s536_s2 + $0x20] sm:$0xff]  ;;  %v81_v2 = vld [vmem:[%s536_s2 + $0x10] sm:$0xff]  ;;  %325 = vset.pattern.permute.xlu2 %v386_v4  ;;  %324 = vset.pattern.permute.xlu1 %v386_v4  ;;  %v84_v8 = vld [vmem:[%s536_s2 + $0x28] sm:$0xff]  ;;  %s389_s21 = smov 8  }
  0x2e   :  { %v79_v3 = vld [vmem:[%s536_s2] sm:$0xff]  ;;  %vm99_vm0 = vcmp.gt.f32.partialorder %v83_v1, 0.5  ;;  %vm97_vm1 = vcmp.gt.f32.partialorder %v81_v2, 0.5  ;;  %323 = vset.pattern.permute.xlu0 %v386_v4  ;;  %v82_v9 = vld [vmem:[%s536_s2 + $0x18] sm:$0xff]  ;;  %v80_v10 = vld [vmem:[%s536_s2 + $0x8] sm:$0xff]  ;;  %vm100_vm3 = vcmp.gt.f32.partialorder %v84_v8, 0.5 }
  0x2f   :  { %vm95_vm2 = vcmp.gt.f32.partialorder %v79_v3, 0.5  ;;  %v151_v5 = vsel %vm99_vm0, 1, %v386_v4  ;;  %v149_v6 = vsel %vm97_vm1, 1, %v386_v4  ;;  %vm98_vm4 = vcmp.gt.f32.partialorder %v82_v9, 0.5  ;;  %v87_v14 = vld [vmem:[%s536_s2 + $0x40] sm:$0xff]  ;;  %v86_v15 = vld [vmem:[%s536_s2 + $0x38] sm:$0xff] }
  0x30   :  { %v147_v7 = vsel %vm95_vm2, 1, %v386_v4  ;;  %176 = vperm.xlu2 %325, %v151_v5   ;;  %170 = vperm.xlu1 %324, %v149_v6   ;;  %vm96_vm5 = vcmp.gt.f32.partialorder %v80_v10, 0.5  ;;  %v152_v11 = vsel %vm100_vm3, 1, %v386_v4  ;;  %v150_v12 = vsel %vm98_vm4, 1, %v386_v4  ;;  %v85_v16 = vld [vmem:[%s536_s2 + $0x30] sm:$0xff]  ;;  %v90_v20 = vld [vmem:[%s536_s2 + $0x58] sm:$0xff] }
  0x31   :  { %164 = vperm.xlu0 %323, %v147_v7   ;;  %v148_v13 = vsel %vm96_vm5, 1, %v386_v4  ;;  %vm103_vm6 = vcmp.gt.f32.partialorder %v87_v14, 0.5  ;;  %vm102_vm7 = vcmp.gt.f32.partialorder %v86_v15, 0.5  ;;  %vm101_vm8 = vcmp.gt.f32.partialorder %v85_v16, 0.5  ;;  %v89_v21 = vld [vmem:[%s536_s2 + $0x50] sm:$0xff]  ;;  %v88_v22 = vld [vmem:[%s536_s2 + $0x48] sm:$0xff] }
  0x32   :  { %v155_v17 = vsel %vm103_vm6, 1, %v386_v4  ;;  %v154_v18 = vsel %vm102_vm7, 1, %v386_v4  ;;  %v153_v19 = vsel %vm101_vm8, 1, %v386_v4  ;;  %vm106_vm9 = vcmp.gt.f32.partialorder %v90_v20, 0.5  ;;  %v93_v26 = vld [vmem:[%s536_s2 + $0x70] sm:$0xff]  ;;  %v92_v27 = vld [vmem:[%s536_s2 + $0x68] sm:$0xff] }
  0x33   :  { %vm105_vm10 = vcmp.gt.f32.partialorder %v89_v21, 0.5  ;;  %vm104_vm11 = vcmp.gt.f32.partialorder %v88_v22, 0.5  ;;  %v158_v23 = vsel %vm106_vm9, 1, %v386_v4  ;;  %v91_v28 = vld [vmem:[%s536_s2 + $0x60] sm:$0xff]  ;;  %vm109_vm12 = vcmp.gt.f32.partialorder %v93_v26, 0.5  ;;  %v94_v32 = vld [vmem:[%s536_s2 + $0x78] sm:$0xff] }
  0x34   :  { %v157_v24 = vsel %vm105_vm10, 1, %v386_v4  ;;  %v156_v25 = vsel %vm104_vm11, 1, %v386_v4  ;;  %vm108_vm13 = vcmp.gt.f32.partialorder %v92_v27, 0.5  ;;  %vm107_vm14 = vcmp.gt.f32.partialorder %v91_v28, 0.5  ;;  %v115_v34 = vld [vmem:[#allocation2 + $0x20] sm:$0xff]  ;;  %v116_v39 = vld [vmem:[#allocation2 + $0x28] sm:$0xff] }
  0x35   :  { %v161_v29 = vsel %vm109_vm12, 1, %v386_v4  ;;  %v160_v30 = vsel %vm108_vm13, 1, %v386_v4  ;;  %v159_v31 = vsel %vm107_vm14, 1, %v386_v4  ;;  %vm110_vm15 = vcmp.gt.f32.partialorder %v94_v32, 0.5  ;;  %v513_v35 = vld [vmem:[%s538_s4] ss:$0 sm:$0xff] }
  0x36   :  { %v162_v33 = vsel %vm110_vm15, 1, %v386_v4  ;;  %v135_v36 = vadd.f32 %v513_v35, %v115_v34  ;;  %v136_v40 = vadd.f32 %v513_v35, %v116_v39  ;;  %v119_v43 = vld [vmem:[#allocation2 + $0x40] sm:$0xff]  ;;  %v122_v47 = vld [vmem:[#allocation2 + $0x58] sm:$0xff]  ;;  %v113_v48 = vld [vmem:[#allocation2 + $0x10] sm:$0xff]  ;;  %s387_s2 = smov [#allocation7]  }
  0x37   :  { %v139_v44 = vadd.f32 %v513_v35, %v119_v43  ;;  %v111_v49 = vld [vmem:[#allocation2] sm:$0xff]  ;;  %v142_v50 = vadd.f32 %v513_v35, %v122_v47  ;;  %v133_v51 = vadd.f32 %v513_v35, %v113_v48  ;;  %v125_v59 = vld [vmem:[#allocation2 + $0x70] sm:$0xff]  ;;  %v114_v60 = vld [vmem:[#allocation2 + $0x18] sm:$0xff]  ;;  %s263_s4 = sshll.u32 %s387_s2, 4  ;;  %s264_s4 = int_to_ptr.vmem [resolvable:$true] %s263_s4 }
  0x38   :  { %179 = vperm.xlu2 %325, %v152_v11   ;;  %173 = vperm.xlu1 %324, %v150_v12   ;;  %v131_v52 = vadd.f32 %v513_v35, %v111_v49  ;;  %v112_v61 = vld [vmem:[#allocation2 + $0x8] sm:$0xff]  ;;  %v145_v62 = vadd.f32 %v513_v35, %v125_v59  ;;  %v134_v63 = vadd.f32 %v513_v35, %v114_v60  ;;  %v118_v7 = vld [vmem:[#allocation2 + $0x38] sm:$0xff]  ;;  %v117_v8 = vld [vmem:[#allocation2 + $0x30] sm:$0xff] }
  0x39   :  { %167 = vperm.xlu0 %323, %v148_v13   ;;  %v132_v0 = vadd.f32 %v513_v35, %v112_v61  ;;  %v138_v9 = vadd.f32 %v513_v35, %v118_v7  ;;  %v137_v10 = vadd.f32 %v513_v35, %v117_v8  ;;  %v121_v15 = vld [vmem:[#allocation2 + $0x50] sm:$0xff]  ;;  %v120_v16 = vld [vmem:[#allocation2 + $0x48] sm:$0xff] }
  0x40   :  { %188 = vperm.xlu2 %325, %v155_v17   ;;  %185 = vperm.xlu1 %324, %v154_v18   ;;  %v141_v17 = vadd.f32 %v513_v35, %v121_v15  ;;  %v140_v18 = vadd.f32 %v513_v35, %v120_v16 }
  0x41   :  { %182 = vperm.xlu0 %323, %v153_v19  }
  0x48   :  { %197 = vperm.xlu2 %325, %v158_v23   ;;  %194 = vperm.xlu1 %324, %v157_v24   ;;  %v124_v23 = vld [vmem:[#allocation2 + $0x68] sm:$0xff]  ;;  %v123_v24 = vld [vmem:[#allocation2 + $0x60] sm:$0xff] }
  0x49   :  { %191 = vperm.xlu0 %323, %v156_v25   ;;  %v144_v25 = vadd.f32 %v513_v35, %v124_v23  ;;  %v143_v26 = vadd.f32 %v513_v35, %v123_v24 }
  0x50   :  { %206 = vperm.xlu2 %325, %v161_v29   ;;  %203 = vperm.xlu1 %324, %v160_v30  }
  0x51   :  { %200 = vperm.xlu0 %323, %v159_v31   ;;  %v126_v31 = vld [vmem:[#allocation2 + $0x78] sm:$0xff] }
  0x52   :  { %v146_v32 = vadd.f32 %v513_v35, %v126_v31 }
  0x59   :  { %209 = vperm.xlu0 %323, %v162_v33  }
  0x8a   :  { %v177_v37 = vpop.permute.xlu2 %176 }
  0x8b   :  { %vm215_vm0 = vcmp.eq.s32.totalorder %v177_v37, 1 }
  0x8c   :  { %v231_v38 = vsel %vm215_vm0, %v135_v36, 0.0 }
  0x8d   :  { %247 = vst [vmem:[#allocation7 + $0x20] sm:$0xff] %v231_v38 }
  0x92   :  { %v180_v41 = vpop.permute.xlu2 %179 }
  0x93   :  { %vm216_vm1 = vcmp.eq.s32.totalorder %v180_v41, 1 }
  0x94   :  { %v232_v42 = vsel %vm216_vm1, %v136_v40, 0.0 }
  0x95   :  { %248 = vst [vmem:[#allocation7 + $0x28] sm:$0xff] %v232_v42 }
  0x9a   :  { %v189_v45 = vpop.permute.xlu2 %188 }
  0x9b   :  { %vm219_vm2 = vcmp.eq.s32.totalorder %v189_v45, 1 }
  0x9c   :  { %v235_v46 = vsel %vm219_vm2, %v139_v44, 0.0 }
  0x9d   :  { %251 = vst [vmem:[#allocation7 + $0x40] sm:$0xff] %v235_v46 }
  0xa2   :  { %v198_v53 = vpop.permute.xlu2 %197  ;;  %v171_v54 = vpop.permute.xlu1 %170 }
  0xa3   :  { %vm222_vm3 = vcmp.eq.s32.totalorder %v198_v53, 1  ;;  %vm213_vm4 = vcmp.eq.s32.totalorder %v171_v54, 1  ;;  %v165_v55 = vpop.permute.xlu0 %164 }
  0xa4   :  { %v238_v56 = vsel %vm222_vm3, %v142_v50, 0.0  ;;  %v229_v57 = vsel %vm213_vm4, %v133_v51, 0.0  ;;  %vm211_vm5 = vcmp.eq.s32.totalorder %v165_v55, 1 }
  0xa5   :  { %254 = vst [vmem:[#allocation7 + $0x58] sm:$0xff] %v238_v56  ;;  %v227_v58 = vsel %vm211_vm5, %v131_v52, 0.0 }
  0xa6   :  { %245 = vst [vmem:[#allocation7 + $0x10] sm:$0xff] %v229_v57 }
  0xa7   :  { %243 = vst [vmem:[#allocation7] sm:$0xff] %v227_v58 }
  0xaa   :  { %v207_v1 = vpop.permute.xlu2 %206  ;;  %v174_v2 = vpop.permute.xlu1 %173 }
  0xab   :  { %vm225_vm6 = vcmp.eq.s32.totalorder %v207_v1, 1  ;;  %vm214_vm7 = vcmp.eq.s32.totalorder %v174_v2, 1  ;;  %v168_v3 = vpop.permute.xlu0 %167 }
  0xac   :  { %v241_v4 = vsel %vm225_vm6, %v145_v62, 0.0  ;;  %v230_v5 = vsel %vm214_vm7, %v134_v63, 0.0  ;;  %vm212_vm8 = vcmp.eq.s32.totalorder %v168_v3, 1 }
  0xad   :  { %257 = vst [vmem:[#allocation7 + $0x70] sm:$0xff] %v241_v4  ;;  %v228_v6 = vsel %vm212_vm8, %v132_v0, 0.0 }
  0xae   :  { %246 = vst [vmem:[#allocation7 + $0x18] sm:$0xff] %v230_v5 }
  0xaf   :  { %244 = vst [vmem:[#allocation7 + $0x8] sm:$0xff] %v228_v6 }
  0xb2   :  { %v186_v11 = vpop.permute.xlu1 %185 }
  0xb3   :  { %vm218_vm9 = vcmp.eq.s32.totalorder %v186_v11, 1  ;;  %v183_v12 = vpop.permute.xlu0 %182 }
  0xb4   :  { %v234_v13 = vsel %vm218_vm9, %v138_v9, 0.0  ;;  %vm217_vm10 = vcmp.eq.s32.totalorder %v183_v12, 1 }
  0xb5   :  { %250 = vst [vmem:[#allocation7 + $0x38] sm:$0xff] %v234_v13  ;;  %v233_v14 = vsel %vm217_vm10, %v137_v10, 0.0 }
  0xb6   :  { %249 = vst [vmem:[#allocation7 + $0x30] sm:$0xff] %v233_v14 }
  0xba   :  { %v195_v19 = vpop.permute.xlu1 %194 }
  0xbb   :  { %vm221_vm11 = vcmp.eq.s32.totalorder %v195_v19, 1  ;;  %v192_v20 = vpop.permute.xlu0 %191 }
  0xbc   :  { %v237_v21 = vsel %vm221_vm11, %v141_v17, 0.0  ;;  %vm220_vm12 = vcmp.eq.s32.totalorder %v192_v20, 1 }
  0xbd   :  { %253 = vst [vmem:[#allocation7 + $0x50] sm:$0xff] %v237_v21  ;;  %v236_v22 = vsel %vm220_vm12, %v140_v18, 0.0 }
  0xbe   :  { %252 = vst [vmem:[#allocation7 + $0x48] sm:$0xff] %v236_v22 }
  0xc2   :  { %v204_v27 = vpop.permute.xlu1 %203 }
  0xc3   :  { %vm224_vm13 = vcmp.eq.s32.totalorder %v204_v27, 1  ;;  %v201_v28 = vpop.permute.xlu0 %200 }
  0xc4   :  { %v240_v29 = vsel %vm224_vm13, %v144_v25, 0.0  ;;  %vm223_vm14 = vcmp.eq.s32.totalorder %v201_v28, 1 }
  0xc5   :  { %256 = vst [vmem:[#allocation7 + $0x68] sm:$0xff] %v240_v29  ;;  %v239_v30 = vsel %vm223_vm14, %v143_v26, 0.0 }
  0xc6   :  { %255 = vst [vmem:[#allocation7 + $0x60] sm:$0xff] %v239_v30 }
  0xcb   :  { %v210_v33 = vpop.permute.xlu0 %209 }
  0xcc   :  { %vm226_vm15 = vcmp.eq.s32.totalorder %v210_v33, 1 }
  0xcd   :  { %v242_v34 = vsel %vm226_vm15, %v146_v32, 0.0 }
  0xce   :  { %258 = vst [vmem:[#allocation7 + $0x78] sm:$0xff] %v242_v34 }
  0xcf   :  { %271 = dma.vmem_to_hbm [thread:$0]  %s264_s4, 2048, %s266_s19, [#allocation8], %s388_s20, %s388_s20, %s389_s21  }
  0xd0   :  { %375 = dma.done.wait [#allocation8], 2048  }
  0xd1   :  { %376 = vsyncadd [#allocation8], 4294965248 }
  0xd2   :  { %276 = vsyncpa [#allocation8], 1 }
  0xd3   :  { %277 = vsyncmov [#allocation3] }
  0xd6   :  { %s278_s22 = vpop.sfrf %277 }
  0xd7   :  { %p301_p3 = scmp.ne.s32.totalorder %s278_s22, 0 }
  0xd9   :  { %282 = shalt.err (%p301_p3)  }

</bundles_post_ra>
